<compile_context>
chip_gen: v5e
topology: v5e:2x2
jax: 0.10.0
libtpu: 0.0.40
codegen_flags: <defaults>
</compile_context>

<pallas_src>
import functools

import jax
import jax.numpy as jnp
from jax.experimental import pallas as pl
from jax.experimental.pallas import tpu as pltpu


def _round_up(v: int, m: int) -> int:
    return (v + m - 1) // m * m


def resblock_kernel(x_ref, wc_ref, bc_ref, w2_ref, b2_ref, o_ref, *, hid_p):
    x = x_ref[...]
    # One fused matmul for both x@W1t and x@Wpt (weights concatenated along the
    # output axis in the wrapper), biases already concatenated to match.
    hp = jnp.dot(x, wc_ref[...], preferred_element_type=jnp.float32) + bc_ref[...]
    h = hp[:, :hid_p]          # hidden activations of F's first Linear (f32)
    p = hp[:, hid_p:]          # projection(x)                            (f32)
    # Second Linear of F (weights pre-transposed, lane-dense output dim).
    f = jnp.dot(h, w2_ref[...], preferred_element_type=jnp.float32) + b2_ref[...]
    o_ref[...] = (p + f).astype(o_ref.dtype)


def residual_block(x, wp, bp, w1, b1, w2, b2, *, tm=256):
    """x: (B, d_in); PyTorch-layout weights: wp (d_out, d_in), w1 (hidden, d_in),
    w2 (d_out, hidden); biases any shape broadcastable to (out_features,)."""
    B, d_in = x.shape
    d_out = wp.shape[0]
    hidden = w1.shape[0]
    dt = x.dtype

    # Lane-dense padded feature dims (multiples of 128).
    d_in_p = _round_up(d_in, 128)
    hid_p = _round_up(hidden, 128)
    d_out_p = _round_up(d_out, 128)

    # Batch tile: biggest tile up to `tm`, multiple of 8; pad B to a tile multiple.
    tm = min(tm, _round_up(B, 8))
    B_p = _round_up(B, tm)

    # Zero-padded input (extra rows/cols are zeros -> math unchanged, sliced away).
    x_p = jnp.zeros((B_p, d_in_p), dt).at[:B, :d_in].set(x)

    # Pre-transposed, zero-padded weights in (in_features, out_features) layout.
    w1t = jnp.zeros((d_in_p, hid_p), dt).at[:d_in, :hidden].set(w1.T)
    wpt = jnp.zeros((d_in_p, d_out_p), dt).at[:d_in, :d_out].set(wp.T)
    wc = jnp.concatenate([w1t, wpt], axis=1)                 # (d_in_p, hid_p+d_out_p)

    b1p = jnp.zeros((1, hid_p), dt).at[:, :hidden].set(jnp.reshape(b1, (1, -1)))
    bpp = jnp.zeros((1, d_out_p), dt).at[:, :d_out].set(jnp.reshape(bp, (1, -1)))
    bc = jnp.concatenate([b1p, bpp], axis=1)                 # (1, hid_p+d_out_p)

    w2t = jnp.zeros((hid_p, d_out_p), dt).at[:hidden, :d_out].set(w2.T)
    b2p = jnp.zeros((1, d_out_p), dt).at[:, :d_out].set(jnp.reshape(b2, (1, -1)))

    n_cat = hid_p + d_out_p
    kernel = functools.partial(resblock_kernel, hid_p=hid_p)

    # Weights/biases fit comfortably in the scoped-VMEM budget at these sizes;
    # for very large hidden/d_out a reduction grid axis would be added instead.
    out_p = pl.pallas_call(
        kernel,
        out_shape=jax.ShapeDtypeStruct((B_p, d_out_p), dt),
        grid_spec=pltpu.PrefetchScalarGridSpec(
            num_scalar_prefetch=0,
            grid=(B_p // tm,),
            in_specs=[
                pl.BlockSpec((tm, d_in_p), lambda i: (i, 0)),       # x tile
                pl.BlockSpec((d_in_p, n_cat), lambda i: (0, 0)),    # [W1t | Wpt]
                pl.BlockSpec((1, n_cat), lambda i: (0, 0)),         # [b1 | bp]
                pl.BlockSpec((hid_p, d_out_p), lambda i: (0, 0)),   # W2t
                pl.BlockSpec((1, d_out_p), lambda i: (0, 0)),       # b2
            ],
            out_specs=pl.BlockSpec((tm, d_out_p), lambda i: (i, 0)),
        ),
        compiler_params=pltpu.CompilerParams(
            dimension_semantics=("parallel",),
            vmem_limit_bytes=64 << 20,
        ),
    )(x_p, wc, bc, w2t, b2p)

    # Strip the batch / lane padding outside the kernel.
    return out_p[:B, :d_out]


def reference(x, wp, bp, w1, b1, w2, b2):
    f = (x @ w1.T + b1) @ w2.T + b2
    p = x @ wp.T + bp
    return p + f


if __name__ == "__main__":
    # Small shapes consistent with the module's forward: (B, D_in) -> (B, D_out)
    B, D_IN, HIDDEN, D_OUT = 8, 32, 64, 48

    key = jax.random.PRNGKey(0)
    k = jax.random.split(key, 7)

    # Deterministic synthetic parameters (PyTorch-style uniform(-1/sqrt(fan_in), ...))
    def init_w(kk, out_f, in_f):
        bound = 1.0 / jnp.sqrt(in_f)
        return jax.random.uniform(kk, (out_f, in_f), jnp.float32, -bound, bound)

    def init_b(kk, out_f, in_f):
        bound = 1.0 / jnp.sqrt(in_f)
        return jax.random.uniform(kk, (1, out_f), jnp.float32, -bound, bound)

    x = jax.random.normal(k[0], (B, D_IN), jnp.float32)

    w1 = init_w(k[1], HIDDEN, D_IN)
    b1 = init_b(k[2], HIDDEN, D_IN)
    w2 = init_w(k[3], D_OUT, HIDDEN)
    b2 = init_b(k[4], D_OUT, HIDDEN)
    wp = init_w(k[5], D_OUT, D_IN)   # self._projection = Linear(D_IN, D_OUT)
    bp = init_b(k[6], D_OUT, D_IN)

    out = residual_block(x, wp, bp, w1, b1, w2, b2)
    out = jax.block_until_ready(out)

    ref = reference(x, wp, bp, w1, b1, w2, b2)
    assert out.shape == (B, D_OUT)
    assert jnp.allclose(out, ref, atol=1e-4, rtol=1e-4), "mismatch vs reference"

    # TODO(synk): the jacobian=True path of ResidualBlock (Jacobian propagation) is
    # not implemented; only the forward value is computed.
    print("KERNEL_OK")
</pallas_src>

<mosaic_0001>
module attributes {stable_mosaic.version = 11 : i64} {
  func.func @resblock_kernel(%arg0: i32, %arg1: memref<8x128xf32, #tpu.memory_space<vmem>>, %arg2: memref<128x256xf32, #tpu.memory_space<vmem>>, %arg3: memref<1x256xf32, #tpu.memory_space<vmem>>, %arg4: memref<128x128xf32, #tpu.memory_space<vmem>>, %arg5: memref<1x128xf32, #tpu.memory_space<vmem>>, %arg6: memref<8x128xf32, #tpu.memory_space<vmem>>) attributes {dimension_semantics = [#tpu.dimension_semantics<parallel>], iteration_bounds = array<i64: 1>, scalar_prefetch = 0 : i64, scratch_operands = 0 : i64, tpu.core_type = #tpu.core_type<tc>, window_params = [{transform_indices = @transform_0, window_bounds = array<i64: 8, 128>}, {pipeline_mode = #tpu.pipeline_mode<synchronous>, transform_indices = @transform_1, window_bounds = array<i64: 128, 256>}, {pipeline_mode = #tpu.pipeline_mode<synchronous>, transform_indices = @transform_2, window_bounds = array<i64: 1, 256>}, {pipeline_mode = #tpu.pipeline_mode<synchronous>, transform_indices = @transform_3, window_bounds = array<i64: 128, 128>}, {pipeline_mode = #tpu.pipeline_mode<synchronous>, transform_indices = @transform_4, window_bounds = array<i64: 1, 128>}, {transform_indices = @transform_5, window_bounds = array<i64: 8, 128>}]} {
    %c0 = arith.constant 0 : index
    %c0_0 = arith.constant 0 : index
    %0 = vector.load %arg1[%c0, %c0_0] : memref<8x128xf32, #tpu.memory_space<vmem>>, vector<8x128xf32>
    %c0_1 = arith.constant 0 : index
    %c0_2 = arith.constant 0 : index
    %1 = vector.load %arg2[%c0_1, %c0_2] : memref<128x256xf32, #tpu.memory_space<vmem>>, vector<128x256xf32>
    %cst = arith.constant dense<0.000000e+00> : vector<8x256xf32>
    %2 = tpu.matmul %0, %1, %cst {dimension_numbers = #tpu.dot_dimension_numbers<[1], [0], [0], [1], [0, 0, 1, 1], [], []>} : vector<8x128xf32>, vector<128x256xf32>, vector<8x256xf32> -> vector<8x256xf32>
    %c0_3 = arith.constant 0 : index
    %c0_4 = arith.constant 0 : index
    %3 = vector.load %arg3[%c0_3, %c0_4] : memref<1x256xf32, #tpu.memory_space<vmem>>, vector<1x256xf32>
    %4 = vector.broadcast %3 : vector<1x256xf32> to vector<8x256xf32>
    %5 = arith.addf %2, %4 : vector<8x256xf32>
    %6 = vector.extract_strided_slice %5 {offsets = [0, 0], sizes = [8, 128], strides = [1, 1]} : vector<8x256xf32> to vector<8x128xf32>
    %7 = vector.extract_strided_slice %5 {offsets = [0, 128], sizes = [8, 128], strides = [1, 1]} : vector<8x256xf32> to vector<8x128xf32>
    %c0_5 = arith.constant 0 : index
    %c0_6 = arith.constant 0 : index
    %8 = vector.load %arg4[%c0_5, %c0_6] : memref<128x128xf32, #tpu.memory_space<vmem>>, vector<128x128xf32>
    %cst_7 = arith.constant dense<0.000000e+00> : vector<8x128xf32>
    %9 = tpu.matmul %6, %8, %cst_7 {dimension_numbers = #tpu.dot_dimension_numbers<[1], [0], [0], [1], [0, 0, 1, 1], [], []>} : vector<8x128xf32>, vector<128x128xf32>, vector<8x128xf32> -> vector<8x128xf32>
    %c0_8 = arith.constant 0 : index
    %c0_9 = arith.constant 0 : index
    %10 = vector.load %arg5[%c0_8, %c0_9] : memref<1x128xf32, #tpu.memory_space<vmem>>, vector<1x128xf32>
    %11 = vector.broadcast %10 : vector<1x128xf32> to vector<8x128xf32>
    %12 = arith.addf %9, %11 : vector<8x128xf32>
    %13 = arith.addf %7, %12 : vector<8x128xf32>
    %c0_10 = arith.constant 0 : index
    %c0_11 = arith.constant 0 : index
    %14 = vector.load %arg6[%c0_10, %c0_11] : memref<8x128xf32, #tpu.memory_space<vmem>>, vector<8x128xf32>
    tpu.vector_store %arg6[%c0_10, %c0_11], %13 {strides = array<i32>} : memref<8x128xf32, #tpu.memory_space<vmem>>, vector<8x128xf32>,
    return
  }
  func.func @transform_0(%arg0: i32) -> (i32, i32) {
    %c0_i32 = arith.constant 0 : i32
    %c0_i32_0 = arith.constant 0 : i32
    return %arg0, %c0_i32 : i32, i32
  }
  func.func @transform_1(%arg0: i32) -> (i32, i32) {
    %c0_i32 = arith.constant 0 : i32
    %c0_i32_0 = arith.constant 0 : i32
    %c0_i32_1 = arith.constant 0 : i32
    return %c0_i32, %c0_i32_0 : i32, i32
  }
  func.func @transform_2(%arg0: i32) -> (i32, i32) {
    %c0_i32 = arith.constant 0 : i32
    %c0_i32_0 = arith.constant 0 : i32
    %c0_i32_1 = arith.constant 0 : i32
    return %c0_i32, %c0_i32_0 : i32, i32
  }
  func.func @transform_3(%arg0: i32) -> (i32, i32) {
    %c0_i32 = arith.constant 0 : i32
    %c0_i32_0 = arith.constant 0 : i32
    %c0_i32_1 = arith.constant 0 : i32
    return %c0_i32, %c0_i32_0 : i32, i32
  }
  func.func @transform_4(%arg0: i32) -> (i32, i32) {
    %c0_i32 = arith.constant 0 : i32
    %c0_i32_0 = arith.constant 0 : i32
    %c0_i32_1 = arith.constant 0 : i32
    return %c0_i32, %c0_i32_0 : i32, i32
  }
  func.func @transform_5(%arg0: i32) -> (i32, i32) {
    %c0_i32 = arith.constant 0 : i32
    %c0_i32_0 = arith.constant 0 : i32
    return %arg0, %c0_i32 : i32, i32
  }
}

</mosaic_0001>

<bundles_post_ra>
// kernel: tpu_custom_call.1
= control target key start
LH: loop header
LB: loop body
LE: loop exit
PB: predicated region body
PF: predicated region fallthrough
CT: control target
= control target key end

     0   :  { %10 = vsyncpa [#allocation3], 0  ;;  %s415_s0 = inlined_call_operand.hbm [shape: f32[8,128], index: 0, kind: input, shape index: {}]   ;;  %s416_s1 = inlined_call_operand.hbm [shape: f32[128,256], index: 1, kind: input, shape index: {}]   ;;  %s417_s2 = inlined_call_operand.hbm [shape: f32[1,256], index: 2, kind: input, shape index: {}]   ;;  %s418_s3 = inlined_call_operand.hbm [shape: f32[128,128], index: 3, kind: input, shape index: {}]   ;;  %s419_s4 = inlined_call_operand.vmem [shape: f32[1,128], index: 4, kind: input, shape index: {}]   ;;  %s420_s5 = inlined_call_operand.hbm [shape: f32[8,128], index: 5, kind: output, shape index: {}]  }
   0x1   :  { %11 = vsyncpa [#allocation6], 0 }
   0x2   :  { %12 = vsyncpa [#allocation9], 0  ;;  %s29_s20 = sshll.u32 %s416_s1, 4  ;;  %s30_s20 = int_to_ptr.hbm [resolvable:$true] %s29_s20 }
   0x3   :  { %13 = vsyncpa [#allocation4], 0  ;;  %s358_s21 = smov [#allocation5]   ;;  %s19_s25 = sshll.u32 %s415_s0, 4  ;;  %s20_s25 = int_to_ptr.hbm [resolvable:$true] %s19_s25 }
   0x4   :  { %s31_s22 = sshll.u32 %s358_s21, 4  ;;  %s359_s26 = smov 256   ;;  %s32_s22 = int_to_ptr.vmem [resolvable:$true] %s31_s22 }
   0x5   :  { %s360_s27 = smov 16   ;;  %s361_s28 = smov [#allocation2]  }
   0x6   :  { %37 = dma.hbm_to_vmem [thread:$0]  %s30_s20, 4096, %s32_s22, [#allocation6], %s359_s26, %s359_s26, %s360_s27  }
   0x7   :  { %s21_s29 = sshll.u32 %s361_s28, 4  ;;  %s43_s7 = sshll.u32 %s417_s2, 4  ;;  %s22_s29 = int_to_ptr.vmem [resolvable:$true] %s21_s29  ;;  %s44_s7 = int_to_ptr.hbm [resolvable:$true] %s43_s7 }
   0x8   :  { %24 = dma.hbm_to_vmem [thread:$0]  %s20_s25, 128, %s22_s29, [#allocation3]  }
   0x9   :  { %s53_s9 = sshll.u32 %s418_s3, 4  ;;  %s362_s10 = smov [#allocation7]   ;;  %s54_s9 = int_to_ptr.hbm [resolvable:$true] %s53_s9 }
   0xa   :  { %s45_s11 = sshll.u32 %s362_s10, 4  ;;  %s363_s0 = smov [#allocation8]   ;;  %s46_s11 = int_to_ptr.vmem [resolvable:$true] %s45_s11 }
   0xb   :  { %48 = dma.hbm_to_vmem [thread:$0]  %s44_s7, 32, %s46_s11, [#allocation6]  }
   0xc   :  { %s55_s12 = sshll.u32 %s363_s0, 4  ;;  %s364_s13 = smov 128   ;;  %s56_s12 = int_to_ptr.vmem [resolvable:$true] %s55_s12 }
   0xd   :  { %s365_s14 = smov 8  }
   0xe   :  { %61 = dma.hbm_to_vmem [thread:$0]  %s54_s9, 2048, %s56_s12, [#allocation9], %s364_s13, %s364_s13, %s365_s14  }
   0xf   :  { %350 = dma.done.wait [#allocation3], 128  }
  0x10   :  { %351 = vsyncadd [#allocation3], 4294967168 }
  0x11   :  { %352 = dma.done.wait [#allocation6], 4128  }
  0x12   :  { %353 = vsyncadd [#allocation6], 4294963168 }
  0x13   :  { %354 = dma.done.wait [#allocation9], 2048  }
  0x14   :  { %355 = vsyncadd [#allocation9], 4294965248  ;;  %v111_v0 = vld [vmem:[#allocation5 + $0xf0] sm:$0xff]  ;;  %v109_v1 = vld [vmem:[#allocation5 + $0xe0] sm:$0xff]  ;;  %s366_s15 = smov [#allocation10]   ;;  %s208_s19 = sshll.u32 %s420_s5, 4  ;;  %s209_s19 = int_to_ptr.hbm [resolvable:$true] %s208_s19 }
  0x15   :  { %119 = vmatpush.msra.mxu0 %v111_v0  ;;  %v107_v2 = vld [vmem:[#allocation5 + $0xd0] sm:$0xff]  ;;  %v105_v3 = vld [vmem:[#allocation5 + $0xc0] sm:$0xff]  ;;  %v112_v7 = vld [vmem:[#allocation5 + $0xf8] sm:$0xff]  ;;  %s206_s16 = sshll.u32 %s366_s15, 4  ;;  %s207_s16 = int_to_ptr.vmem [resolvable:$true] %s206_s16 }
  0x16   :  { %v174_v4 = vld [vmem:[#allocation8 + $0x78] sm:$0xff]  ;;  %v103_v5 = vld [vmem:[#allocation5 + $0xb0] sm:$0xff]  ;;  %139 = vmatpush.msra.mxu1 %v112_v7  ;;  %v110_v9 = vld [vmem:[#allocation5 + $0xe8] sm:$0xff] }
  0x17   :  { %120 = vmatpush.msra.mxu0 %v109_v1  ;;  %179 = vmatpush.msra.mxu2 %v174_v4  ;;  %v173_v6 = vld [vmem:[#allocation8 + $0x70] sm:$0xff]  ;;  %v172_v8 = vld [vmem:[#allocation8 + $0x68] sm:$0xff]  ;;  %v101_v10 = vld [vmem:[#allocation5 + $0xa0] sm:$0xff] }
  0x18   :  { %v108_v11 = vld [vmem:[#allocation5 + $0xd8] sm:$0xff]  ;;  %v171_v12 = vld [vmem:[#allocation8 + $0x60] sm:$0xff]  ;;  %140 = vmatpush.msra.mxu1 %v110_v9  ;;  %v99_v13 = vld [vmem:[#allocation5 + $0x90] sm:$0xff] }
  0x19   :  { %121 = vmatpush.msra.mxu0 %v107_v2  ;;  %180 = vmatpush.msra.mxu2 %v173_v6  ;;  %v106_v14 = vld [vmem:[#allocation5 + $0xc8] sm:$0xff]  ;;  %v170_v15 = vld [vmem:[#allocation8 + $0x58] sm:$0xff]  ;;  %v169_v18 = vld [vmem:[#allocation8 + $0x50] sm:$0xff] }
  0x1a   :  { %141 = vmatpush.msra.mxu1 %v108_v11  ;;  %v97_v16 = vld [vmem:[#allocation5 + $0x80] sm:$0xff]  ;;  %v104_v17 = vld [vmem:[#allocation5 + $0xb8] sm:$0xff]  ;;  %v95_v19 = vld [vmem:[#allocation5 + $0x70] sm:$0xff] }
  0x1b   :  { %122 = vmatpush.msra.mxu0 %v105_v3  ;;  %181 = vmatpush.msra.mxu2 %v172_v8  ;;  %v102_v20 = vld [vmem:[#allocation5 + $0xa8] sm:$0xff]  ;;  %v93_v22 = vld [vmem:[#allocation5 + $0x60] sm:$0xff]  ;;  %v100_v23 = vld [vmem:[#allocation5 + $0x98] sm:$0xff] }
  0x1c   :  { %142 = vmatpush.msra.mxu1 %v106_v14  ;;  %v168_v21 = vld [vmem:[#allocation8 + $0x48] sm:$0xff]  ;;  %v167_v24 = vld [vmem:[#allocation8 + $0x40] sm:$0xff]  ;;  %v166_v27 = vld [vmem:[#allocation8 + $0x38] sm:$0xff] }
  0x1d   :  { %123 = vmatpush.msra.mxu0 %v103_v5  ;;  %182 = vmatpush.msra.mxu2 %v171_v12  ;;  %v91_v25 = vld [vmem:[#allocation5 + $0x50] sm:$0xff]  ;;  %v98_v26 = vld [vmem:[#allocation5 + $0x88] sm:$0xff]  ;;  %v89_v28 = vld [vmem:[#allocation5 + $0x40] sm:$0xff] }
  0x1e   :  { %143 = vmatpush.msra.mxu1 %v104_v17  ;;  %v96_v29 = vld [vmem:[#allocation5 + $0x78] sm:$0xff]  ;;  %v87_v31 = vld [vmem:[#allocation5 + $0x30] sm:$0xff]  ;;  %v94_v32 = vld [vmem:[#allocation5 + $0x68] sm:$0xff] }
  0x1f   :  { %124 = vmatpush.msra.mxu0 %v101_v10  ;;  %183 = vmatpush.msra.mxu2 %v170_v15  ;;  %v165_v30 = vld [vmem:[#allocation8 + $0x30] sm:$0xff]  ;;  %v164_v33 = vld [vmem:[#allocation8 + $0x28] sm:$0xff]  ;;  %v85_v34 = vld [vmem:[#allocation5 + $0x20] sm:$0xff] }
  0x20   :  { %144 = vmatpush.msra.mxu1 %v102_v20  ;;  %v92_v35 = vld [vmem:[#allocation5 + $0x58] sm:$0xff]  ;;  %v163_v36 = vld [vmem:[#allocation8 + $0x20] sm:$0xff]  ;;  %v83_v37 = vld [vmem:[#allocation5 + $0x10] sm:$0xff] }
  0x21   :  { %125 = vmatpush.msra.mxu0 %v99_v13  ;;  %184 = vmatpush.msra.mxu2 %v169_v18  ;;  %v162_v38 = vld [vmem:[#allocation8 + $0x18] sm:$0xff]  ;;  %v161_v41 = vld [vmem:[#allocation8 + $0x10] sm:$0xff]  ;;  %v90_v42 = vld [vmem:[#allocation5 + $0x48] sm:$0xff] }
  0x22   :  { %145 = vmatpush.msra.mxu1 %v100_v23  ;;  %v81_v39 = vld [vmem:[#allocation5] sm:$0xff]  ;;  %v80_v40 = vld [vmem:[#allocation2] sm:$0xff]  ;;  %v160_v43 = vld [vmem:[#allocation8 + $0x8] sm:$0xff] }
  0x23   :  { %126 = vmatpush.msra.mxu0 %v97_v16  ;;  %185 = vmatpush.msra.mxu2 %v168_v21  ;;  %v88_v44 = vld [vmem:[#allocation5 + $0x38] sm:$0xff]  ;;  %v159_v45 = vld [vmem:[#allocation8] sm:$0xff]  ;;  %v113_v49 = vld [vmem:[#allocation7] sm:$0x3] }
  0x24   :  { %146 = vmatpush.msra.mxu1 %v98_v26  ;;  %v86_v46 = vld [vmem:[#allocation5 + $0x28] sm:$0xff]  ;;  %v84_v47 = vld [vmem:[#allocation5 + $0x18] sm:$0xff]  ;;  %v115_v50 = vperm.slane %v113_v49, 0  ;;  %v116_v53 = vperm.slane %v113_v49, 1 }
  0x25   :  { %127 = vmatpush.msra.mxu0 %v95_v19  ;;  %186 = vmatpush.msra.mxu2 %v167_v24  ;;  %v82_v48 = vld [vmem:[#allocation5 + $0x8] sm:$0xff]  ;;  %v229_v55 = vld [vmem:[%s419_s4] ss:$0 sm:$0xff] }
  0x26   :  { %147 = vmatpush.msra.mxu1 %v96_v29 }
  0x27   :  { %128 = vmatpush.msra.mxu0 %v93_v22  ;;  %187 = vmatpush.msra.mxu2 %v166_v27 }
  0x28   :  { %148 = vmatpush.msra.mxu1 %v94_v32 }
  0x29   :  { %129 = vmatpush.msra.mxu0 %v91_v25  ;;  %188 = vmatpush.msra.mxu2 %v165_v30 }
  0x2a   :  { %149 = vmatpush.msra.mxu1 %v92_v35 }
  0x2b   :  { %130 = vmatpush.msra.mxu0 %v89_v28  ;;  %189 = vmatpush.msra.mxu2 %v164_v33 }
  0x2c   :  { %150 = vmatpush.msra.mxu1 %v90_v42 }
  0x2d   :  { %131 = vmatpush.msra.mxu0 %v87_v31  ;;  %190 = vmatpush.msra.mxu2 %v163_v36 }
  0x2e   :  { %151 = vmatpush.msra.mxu1 %v88_v44 }
  0x2f   :  { %132 = vmatpush.msra.mxu0 %v85_v34  ;;  %191 = vmatpush.msra.mxu2 %v162_v38 }
  0x30   :  { %152 = vmatpush.msra.mxu1 %v86_v46 }
  0x31   :  { %133 = vmatpush.msra.mxu0 %v83_v37  ;;  %192 = vmatpush.msra.mxu2 %v161_v41 }
  0x32   :  { %153 = vmatpush.msra.mxu1 %v84_v47 }
  0x33   :  { %134 = vmatpush.msra.mxu0 %v81_v39  ;;  %193 = vmatpush.msra.mxu2 %v160_v43 }
  0x34   :  { %135 = vmatmul.f32.vlgmr.msra.gmra.mxu0 %v80_v40  ;;  %154 = vmatpush.msra.mxu1 %v82_v48 }
  0x35   :  { %194 = vmatpush.msra.mxu2 %v159_v45  ;;  %155 = vmatmul.f32.vlgmr.msra.gmra.mxu1 %v80_v40 }
  0xb1   :  { %v136_v51 = vpop.f32.mrf.mxu0 }
  0xb2   :  { %v137_v52 = vadd.f32 %v136_v51, %v115_v50  ;;  %v156_v54 = vpop.f32.mrf.mxu1 }
  0xb3   :  { %v157_v56 = vadd.f32 %v156_v54, %v116_v53 }
  0xb4   :  { %195 = vmatmul.f32.vlgmr.msra.gmra.mxu2 %v137_v52 }
 0x137   :  { %v196_v57 = vpop.f32.mrf.mxu2 }
 0x138   :  { %v197_v58 = vadd.f32 %v229_v55, %v196_v57 }
 0x13a   :  { %v199_v59 = vadd.f32 %v197_v58, %v157_v56 }
 0x13c   :  { %200 = vst [vmem:[#allocation10] sm:$0xff] %v199_v59 }
 0x13d   :  { %211 = dma.vmem_to_hbm [thread:$0]  %s207_s16, 128, %s209_s19, [#allocation4]  }
 0x13e   :  { %356 = dma.done.wait [#allocation4], 128  }
 0x13f   :  { %357 = vsyncadd [#allocation4], 4294967168 }
 0x140   :  { %216 = vsyncpa [#allocation3], 1 }
 0x141   :  { %217 = vsyncpa [#allocation6], 1 }
 0x142   :  { %218 = vsyncpa [#allocation9], 1 }
 0x143   :  { %219 = vsyncpa [#allocation4], 1 }

</bundles_post_ra>
